<compile_context>
chip_gen: v7x
topology: tpu7x:2x2x1
jax: 0.10.0
libtpu: 0.0.40
codegen_flags: <defaults>
</compile_context>

<pallas_src>
import functools

import jax
import jax.numpy as jnp
from jax.experimental import pallas as pl
from jax.experimental.pallas import tpu as pltpu

EMBED_SIZE = 384          # from the module
BLOCK_SIZE = 256          # max context length in the module
HEAD_SIZE = 64            # typical head_size = embed_size // n_head


# ---------------------------------------------------------------------------
# Pallas kernel: one batch element per grid step
# ---------------------------------------------------------------------------
def _head_kernel(x_ref, w_ref, o_ref, *, scale, head_size):
    # x_ref: (1, T, E) bf16   w_ref: (E, 3*Dh) bf16   o_ref: (1, T, Dh) f32
    x = x_ref[0]                                     # (T, E)   bf16
    w = w_ref[...]                                   # (E, 3Dh) bf16

    # Fused Q/K/V projection: one MXU call, f32 accumulation.
    qkv = jnp.dot(x, w, preferred_element_type=jnp.float32)       # (T, 3Dh) f32

    # Fold the attention scale into q while still f32 (cheaper than scaling
    # the (T, T) score matrix, and keeps bf16 rounding after the scale).
    q = (qkv[:, 0 * head_size:1 * head_size] * scale).astype(jnp.bfloat16)
    k = qkv[:, 1 * head_size:2 * head_size].astype(jnp.bfloat16)  # (T, Dh)
    v = qkv[:, 2 * head_size:3 * head_size].astype(jnp.bfloat16)  # (T, Dh)

    # Scores: contract last dims directly (avoids an explicit k transpose).
    s = jax.lax.dot_general(
        q, k, (((1,), (1,)), ((), ())),
        preferred_element_type=jnp.float32)                        # (T, T) f32

    # Causal mask (built once per grid step, pure VPU work).
    T = s.shape[0]
    row = jax.lax.broadcasted_iota(jnp.int32, (T, T), 0)
    col = jax.lax.broadcasted_iota(jnp.int32, (T, T), 1)
    s = jnp.where(col <= row, s, -jnp.inf)

    # Softmax in f32; reciprocal on the EUP (approx) instead of a VPU divide.
    m = jnp.max(s, axis=-1, keepdims=True)
    p = jnp.exp(s - m)
    denom = jnp.sum(p, axis=-1, keepdims=True)
    p = p * pl.reciprocal(denom, approx=True)

    # TODO(synk): training-mode dropout on `p` (pltpu.prng_*) not implemented
    #             (eval mode => identity).

    out = jnp.dot(p.astype(jnp.bfloat16), v,
                  preferred_element_type=jnp.float32)              # (T, Dh) f32
    o_ref[0] = out.astype(o_ref.dtype)


def head_forward(x, w_q, w_k, w_v):
    """x: (B, T, E) f32; w_q/w_k/w_v: (E, Dh) f32  ->  (B, T, Dh) f32."""
    B, T, E = x.shape
    Dh = w_q.shape[1]
    assert T <= BLOCK_SIZE and E == EMBED_SIZE

    # Fuse the three projections into a single weight; feed the MXU bf16.
    w_qkv = jnp.concatenate([w_q, w_k, w_v], axis=1).astype(jnp.bfloat16)  # (E, 3Dh)
    x_b = x.astype(jnp.bfloat16)

    scale = float(E) ** -0.5   # Channels**-0.5, exactly as in the torch module

    return pl.pallas_call(
        functools.partial(_head_kernel, scale=scale, head_size=Dh),
        out_shape=jax.ShapeDtypeStruct((B, T, Dh), jnp.float32),
        grid=(B,),
        in_specs=[
            pl.BlockSpec((1, T, E), lambda b: (b, 0, 0)),   # per-batch activation
            pl.BlockSpec((E, 3 * Dh), lambda b: (0, 0)),    # resident fused weight
        ],
        out_specs=pl.BlockSpec((1, T, Dh), lambda b: (b, 0, 0)),
        compiler_params=pltpu.CompilerParams(
            dimension_semantics=("parallel",)),             # megacore over batch
    )(x_b, w_qkv)


# ---------------------------------------------------------------------------
# Pure-JAX reference (f32) for correctness checking
# ---------------------------------------------------------------------------
def head_reference(x, w_q, w_k, w_v):
    B, T, C = x.shape
    q = x @ w_q
    k = x @ w_k
    v = x @ w_v
    s = jnp.einsum("btd,bsd->bts", q, k) * (float(C) ** -0.5)
    mask = jnp.tril(jnp.ones((T, T), dtype=bool))
    s = jnp.where(mask[None], s, -jnp.inf)
    p = jax.nn.softmax(s, axis=-1)
    return jnp.einsum("bts,bsd->btd", p, v)


if __name__ == "__main__":
    key = jax.random.PRNGKey(0)
    kx, kq, kk, kv = jax.random.split(key, 4)

    B, T = 2, 128                      # small shapes, T <= block_size (256)
    x = jax.random.normal(kx, (B, T, EMBED_SIZE), dtype=jnp.float32)
    init = 1.0 / (EMBED_SIZE ** 0.5)
    w_q = init * jax.random.normal(kq, (EMBED_SIZE, HEAD_SIZE), dtype=jnp.float32)
    w_k = init * jax.random.normal(kk, (EMBED_SIZE, HEAD_SIZE), dtype=jnp.float32)
    w_v = init * jax.random.normal(kv, (EMBED_SIZE, HEAD_SIZE), dtype=jnp.float32)

    fwd = jax.jit(head_forward)
    out = fwd(x, w_q, w_k, w_v)
    jax.block_until_ready(out)

    assert out.shape == (B, T, HEAD_SIZE)
    assert bool(jnp.all(jnp.isfinite(out)))

    ref = head_reference(x, w_q, w_k, w_v)
    max_err = float(jnp.max(jnp.abs(out - ref)))
    assert max_err < 0.1, f"mismatch vs f32 reference: max_err={max_err}"

    print("KERNEL_OK")
</pallas_src>

<mosaic_0001>
module attributes {stable_mosaic.version = 11 : i64} {
  func.func @_head_kernel(%arg0: i32, %arg1: memref<1x128x384xbf16, #tpu.memory_space<vmem>>, %arg2: memref<384x192xbf16, #tpu.memory_space<vmem>>, %arg3: memref<1x128x64xf32, #tpu.memory_space<vmem>>) attributes {dimension_semantics = [#tpu.dimension_semantics<parallel>], iteration_bounds = array<i64: 2>, scalar_prefetch = 0 : i64, scratch_operands = 0 : i64, tpu.core_type = #tpu.core_type<tc>, window_params = [{transform_indices = @transform_0, window_bounds = array<i64: 1, 128, 384>}, {pipeline_mode = #tpu.pipeline_mode<synchronous>, transform_indices = @transform_1, window_bounds = array<i64: 384, 192>}, {transform_indices = @transform_2, window_bounds = array<i64: 1, 128, 64>}]} {
    %c0 = arith.constant 0 : index
    %c0_0 = arith.constant 0 : index
    %c0_1 = arith.constant 0 : index
    %0 = vector.load %arg1[%c0, %c0_0, %c0_1] : memref<1x128x384xbf16, #tpu.memory_space<vmem>>, vector<1x128x384xbf16>
    %1 = vector.shape_cast %0 : vector<1x128x384xbf16> to vector<128x384xbf16>
    %c0_2 = arith.constant 0 : index
    %c0_3 = arith.constant 0 : index
    %2 = vector.load %arg2[%c0_2, %c0_3] : memref<384x192xbf16, #tpu.memory_space<vmem>>, vector<384x192xbf16>
    %cst = arith.constant dense<0.000000e+00> : vector<128x192xf32>
    %3 = tpu.matmul %1, %2, %cst {dimension_numbers = #tpu.dot_dimension_numbers<[1], [0], [0], [1], [0, 0, 1, 1], [], []>} : vector<128x384xbf16>, vector<384x192xbf16>, vector<128x192xf32> -> vector<128x192xf32>
    %4 = vector.extract_strided_slice %3 {offsets = [0, 0], sizes = [128, 64], strides = [1, 1]} : vector<128x192xf32> to vector<128x64xf32>
    %cst_4 = arith.constant 0.0510310382 : f32
    %5 = vector.broadcast %cst_4 : f32 to vector<128x64xf32>
    %6 = arith.mulf %4, %5 : vector<128x64xf32>
    %7 = arith.truncf %6 : vector<128x64xf32> to vector<128x64xbf16>
    %8 = vector.extract_strided_slice %3 {offsets = [0, 64], sizes = [128, 64], strides = [1, 1]} : vector<128x192xf32> to vector<128x64xf32>
    %9 = arith.truncf %8 : vector<128x64xf32> to vector<128x64xbf16>
    %10 = vector.extract_strided_slice %3 {offsets = [0, 128], sizes = [128, 64], strides = [1, 1]} : vector<128x192xf32> to vector<128x64xf32>
    %11 = arith.truncf %10 : vector<128x64xf32> to vector<128x64xbf16>
    %cst_5 = arith.constant dense<0.000000e+00> : vector<128x128xf32>
    %12 = tpu.matmul %7, %9, %cst_5 {dimension_numbers = #tpu.dot_dimension_numbers<[1], [1], [0], [0], [0, 0, 1, 0], [], []>} : vector<128x64xbf16>, vector<128x64xbf16>, vector<128x128xf32> -> vector<128x128xf32>
    %13 = tpu.iota {dimensions = array<i32: 0>} : vector<128x128xi32>
    %14 = tpu.iota {dimensions = array<i32: 1>} : vector<128x128xi32>
    %15 = arith.cmpi sle, %14, %13 : vector<128x128xi32>
    %cst_6 = arith.constant 0xFF800000 : f32
    %16 = vector.broadcast %cst_6 : f32 to vector<128x128xf32>
    %17 = arith.select %15, %12, %16 : vector<128x128xi1>, vector<128x128xf32>
    %cst_7 = arith.constant dense<0xFF800000> : vector<128xf32>
    %18 = vector.multi_reduction <maximumf>, %17, %cst_7 [1] : vector<128x128xf32> to vector<128xf32>
    %19 = vector.shape_cast %18 : vector<128xf32> to vector<128x1xf32>
    %20 = vector.broadcast %19 : vector<128x1xf32> to vector<128x128xf32>
    %21 = arith.subf %17, %20 : vector<128x128xf32>
    %22 = math.exp %21 : vector<128x128xf32>
    %cst_8 = arith.constant dense<0.000000e+00> : vector<128xf32>
    %23 = vector.multi_reduction <add>, %22, %cst_8 [1] : vector<128x128xf32> to vector<128xf32>
    %24 = vector.shape_cast %23 : vector<128xf32> to vector<128x1xf32>
    %25 = tpu.reciprocal %24 {approx = true} : vector<128x1xf32> -> vector<128x1xf32>
    %26 = vector.broadcast %25 : vector<128x1xf32> to vector<128x128xf32>
    %27 = arith.mulf %22, %26 : vector<128x128xf32>
    %28 = arith.truncf %27 : vector<128x128xf32> to vector<128x128xbf16>
    %cst_9 = arith.constant dense<0.000000e+00> : vector<128x64xf32>
    %29 = tpu.matmul %28, %11, %cst_9 {dimension_numbers = #tpu.dot_dimension_numbers<[1], [0], [0], [1], [0, 0, 1, 1], [], []>} : vector<128x128xbf16>, vector<128x64xbf16>, vector<128x64xf32> -> vector<128x64xf32>
    %c0_10 = arith.constant 0 : index
    %c0_11 = arith.constant 0 : index
    %c0_12 = arith.constant 0 : index
    %30 = vector.load %arg3[%c0_10, %c0_11, %c0_12] : memref<1x128x64xf32, #tpu.memory_space<vmem>>, vector<1x128x64xf32>
    %31 = vector.shape_cast %30 : vector<1x128x64xf32> to vector<128x64xf32>
    %32 = vector.shape_cast %29 : vector<128x64xf32> to vector<1x128x64xf32>
    tpu.vector_store %arg3[%c0_10, %c0_11, %c0_12], %32 {strides = array<i32>} : memref<1x128x64xf32, #tpu.memory_space<vmem>>, vector<1x128x64xf32>,
    return
  }
  func.func @transform_0(%arg0: i32) -> (i32, i32, i32) {
    %c0_i32 = arith.constant 0 : i32
    %c0_i32_0 = arith.constant 0 : i32
    %c0_i32_1 = arith.constant 0 : i32
    return %arg0, %c0_i32, %c0_i32_0 : i32, i32, i32
  }
  func.func @transform_1(%arg0: i32) -> (i32, i32) {
    %c0_i32 = arith.constant 0 : i32
    %c0_i32_0 = arith.constant 0 : i32
    %c0_i32_1 = arith.constant 0 : i32
    return %c0_i32, %c0_i32_0 : i32, i32
  }
  func.func @transform_2(%arg0: i32) -> (i32, i32, i32) {
    %c0_i32 = arith.constant 0 : i32
    %c0_i32_0 = arith.constant 0 : i32
    %c0_i32_1 = arith.constant 0 : i32
    return %arg0, %c0_i32, %c0_i32_0 : i32, i32, i32
  }
}

</mosaic_0001>

<bundles_post_ra>
// kernel: head_forward.1
= control target key start
LH: loop header
LB: loop body
LE: loop exit
PB: predicated region body
PF: predicated region fallthrough
CT: control target
= control target key end

     0   :  { %s1847_s9 = smov 0   ;;  %s2376_s0 = inlined_call_operand.vmem [shape: bf16[2,128,384], index: 0, kind: input, shape index: {}]   ;;  %s2377_s1 = inlined_call_operand.vmem [shape: bf16[384,192], index: 1, kind: input, shape index: {}]   ;;  %s2378_s2 = inlined_call_operand.vmem [shape: f32[2,128,64], index: 2, kind: output, shape index: {}]  }
   0x1 LB: > { %s1400_s10 = sadd.s32 4294967295, %s1828_s9   ;;  %p1404_p0 = scmp.ge.s32.totalorder %s1828_s9, 1  ;;  %s1828_s9 = sphi %s1847_s9, %s12_s9  }
   0x2   : > { %p112_p1 = scmp.lt.s32.totalorder %s1828_s9, 3 }
   0x4   : > { %p113_p2 = pnand %p1404_p0, %p112_p1 }
   0x5   : > { %v1654_v0 = vld [vmem:[%s2377_s1 + $0x4] ss:$8 sps:$4 sm:$0xff] (!%p113_p2)   ;;  %v1656_v1 = vld [vmem:[%s2377_s1] ss:$8 sps:$4 sm:$0xff] (!%p113_p2)   ;;  %v1830_v2 = vmov (!%p113_p2), 0   ;;  %p134_p3 = scmp.lt.s32.totalorder (!%p113_p2), %s1400_s10, 1 }
   0x6   : > { %116 = sbr.rel (%p113_p2) target bundleno = 1247 (0x4df), region = 28  ;;  %738 = vmatprep.mubr.bf16.mxu1 (!%p113_p2), %v1830_v2  ;;  %593 = vmatprep.subr.bf16.mxu0 (!%p113_p2), %v1654_v0  ;;  %v1657_v3 = vld [vmem:[%s2377_s1 + $0x14] ss:$8 sps:$4 sm:$0xff] (!%p113_p2)   ;;  %v1659_v4 = vld [vmem:[%s2377_s1 + $0x10] ss:$8 sps:$4 sm:$0xff] (!%p113_p2)   ;;  %vm883_vm0 = vcmask (!%p113_p2), 523264  }
   0x7   : > { %594 = vmatpush1.bf16.msra.mxu0 (!%p113_p2), %v1656_v1  ;;  %v1660_v5 = vld [vmem:[%s2377_s1 + $0x24] ss:$8 sps:$4 sm:$0xff] (!%p113_p2)   ;;  %v1662_v6 = vld [vmem:[%s2377_s1 + $0x20] ss:$8 sps:$4 sm:$0xff] (!%p113_p2)   ;;  %v1663_v7 = vld [vmem:[%s2377_s1 + $0x34] ss:$8 sps:$4 sm:$0xff] (!%p113_p2)  }
   0x8   : > { %595 = vmatprep.subr.bf16.mxu0 (!%p113_p2), %v1657_v3  ;;  %v1665_v8 = vld [vmem:[%s2377_s1 + $0x30] ss:$8 sps:$4 sm:$0xff] (!%p113_p2)   ;;  %v1678_v9 = vld [vmem:[%s2377_s1 + $0x104] ss:$8 sps:$4 sm:$0xff] (!%p113_p2)   ;;  %v1680_v10 = vld [vmem:[%s2377_s1 + $0x100] ss:$8 sps:$4 sm:$0xff] (!%p113_p2)  }
   0x9   : > { %v1666_v11 = vld [vmem:[%s2377_s1 + $0x44] ss:$8 sps:$4 sm:$0xff] (!%p113_p2)   ;;  %706 = vmatprep.subr.bf16.mxu1 (!%p113_p2), %v1678_v9  ;;  %v1684_v12 = vld [vmem:[%s2377_s1 + $0x114] ss:$8 sps:$4 sm:$0xff] (!%p113_p2)   ;;  %v1686_v13 = vld [vmem:[%s2377_s1 + $0x110] ss:$8 sps:$4 sm:$0xff] (!%p113_p2)  }
   0xa   : > { %707 = vmatpush1.bf16.msra.mxu1 (!%p113_p2), %v1680_v10  ;;  %v1668_v14 = vld [vmem:[%s2377_s1 + $0x40] ss:$8 sps:$4 sm:$0xff] (!%p113_p2)   ;;  %v1669_v15 = vld [vmem:[%s2377_s1 + $0x54] ss:$8 sps:$4 sm:$0xff] (!%p113_p2)   ;;  %v1690_v16 = vld [vmem:[%s2377_s1 + $0x124] ss:$8 sps:$4 sm:$0xff] (!%p113_p2)  }
   0xb   : > { %596 = vmatpush1.bf16.msra.mxu0 (!%p113_p2), %v1659_v4  ;;  %708 = vmatprep.subr.bf16.mxu1 (!%p113_p2), %v1684_v12  ;;  %v1692_v17 = vld [vmem:[%s2377_s1 + $0x120] ss:$8 sps:$4 sm:$0xff] (!%p113_p2)   ;;  %v1671_v18 = vld [vmem:[%s2377_s1 + $0x50] ss:$8 sps:$4 sm:$0xff] (!%p113_p2)   ;;  %v1696_v19 = vld [vmem:[%s2377_s1 + $0x134] ss:$8 sps:$4 sm:$0xff] (!%p113_p2)  }
   0xc   : > { %597 = vmatprep.subr.bf16.mxu0 (!%p113_p2), %v1660_v5  ;;  %v1672_v20 = vld [vmem:[%s2377_s1 + $0x64] ss:$8 sps:$4 sm:$0xff] (!%p113_p2)   ;;  %v1698_v21 = vld [vmem:[%s2377_s1 + $0x130] ss:$8 sps:$4 sm:$0xff] (!%p113_p2)   ;;  %v1674_v22 = vld [vmem:[%s2377_s1 + $0x60] ss:$8 sps:$4 sm:$0xff] (!%p113_p2)  }
   0xd   : > { %v1702_v23 = vld [vmem:[%s2377_s1 + $0x144] ss:$8 sps:$4 sm:$0xff]   ;;  %s2380_s10 = smov (!%p134_p3, %s1400_s10), 1  ;;  %v1675_v24 = vld [vmem:[%s2377_s1 + $0x74] ss:$8 sps:$4 sm:$0xff]  }
   0xe   : > { %709 = vmatpush1.bf16.msra.mxu1 %v1686_v13  ;;  %v1704_v25 = vld [vmem:[%s2377_s1 + $0x140] ss:$8 sps:$4 sm:$0xff]   ;;  %v1677_v26 = vld [vmem:[%s2377_s1 + $0x70] ss:$8 sps:$4 sm:$0xff]   ;;  %v1708_v27 = vld [vmem:[%s2377_s1 + $0x154] ss:$8 sps:$4 sm:$0xff]  }
   0xf   : > { %598 = vmatpush1.bf16.msra.mxu0 %v1662_v6  ;;  %710 = vmatprep.subr.bf16.mxu1 %v1690_v16  ;;  %s1643_s13 = smul.u32 192, %s2380_s10  ;;  %v1681_v28 = vld [vmem:[%s2377_s1 + $0x84] ss:$8 sps:$4 sm:$0xff]   ;;  %v1710_v29 = vld [vmem:[%s2377_s1 + $0x150] ss:$8 sps:$4 sm:$0xff]   ;;  %s1490_s6 = sshll.u32 %s2380_s10, 7 }
  0x10   : > { %599 = vmatprep.subr.bf16.mxu0 %v1663_v7  ;;  %v1683_v30 = vld [vmem:[%s2377_s1 + $0x80] ss:$8 sps:$4 sm:$0xff]   ;;  %v1714_v31 = vld [vmem:[%s2377_s1 + $0x164] ss:$8 sps:$4 sm:$0xff]   ;;  %v1687_v32 = vld [vmem:[%s2377_s1 + $0x94] ss:$8 sps:$4 sm:$0xff]   ;;  %s2339_s11 = scalar_lea.vmem %s2378_s2, %s1490_s6 }
  0x11   : > { %s1959_s24 = scalar_lea.vmem %s2376_s0, %s1643_s13  ;;  %v1689_v33 = vld [vmem:[%s2377_s1 + $0x90] ss:$8 sps:$4 sm:$0xff]   ;;  %v1716_v34 = vld [vmem:[%s2377_s1 + $0x160] ss:$8 sps:$4 sm:$0xff]   ;;  %v1720_v36 = vld [vmem:[%s2377_s1 + $0x174] ss:$8 sps:$4 sm:$0xff]  }
  0x12   : > { %711 = vmatpush1.bf16.msra.mxu1 %v1692_v17  ;;  %v1729_v35 = vld [vmem:[%s1959_s24 + $0x4] ss:$12 sps:$4 sm:$0xff]   ;;  %v1695_v39 = vld [vmem:[%s2377_s1 + $0xa0] ss:$8 sps:$4 sm:$0xff]   ;;  %v1699_v40 = vld [vmem:[%s2377_s1 + $0xb4] ss:$8 sps:$4 sm:$0xff]  }
  0x13   : > { %600 = vmatpush1.bf16.msra.mxu0 %v1665_v8  ;;  %712 = vmatprep.subr.bf16.mxu1 %v1696_v19  ;;  %v1693_v37 = vld [vmem:[%s2377_s1 + $0xa4] ss:$8 sps:$4 sm:$0xff]   ;;  %v1722_v38 = vld [vmem:[%s2377_s1 + $0x170] ss:$8 sps:$4 sm:$0xff]   ;;  %v1726_v41 = vld [vmem:[%s1959_s24 + $0x8] ss:$12 sps:$4 sm:$0xff]  }
  0x14   : > { %601 = vmatprep.subr.bf16.mxu0 %v1666_v11  ;;  %625 = vmatprep.mubr.bf16.mxu0 %v1729_v35  ;;  %v1701_v42 = vld [vmem:[%s2377_s1 + $0xb0] ss:$8 sps:$4 sm:$0xff]   ;;  %v1705_v43 = vld [vmem:[%s2377_s1 + $0xc4] ss:$8 sps:$4 sm:$0xff]   ;;  %v1707_v44 = vld [vmem:[%s2377_s1 + $0xc0] ss:$8 sps:$4 sm:$0xff]  }
  0x15   : > { %v1711_v45 = vld [vmem:[%s2377_s1 + $0xd4] ss:$8 sps:$4 sm:$0xff]   ;;  %v1730_v46 = vld [vmem:[%s1959_s24 + $0x20] ss:$12 sps:$4 sm:$0xff]   ;;  %v1713_v47 = vld [vmem:[%s2377_s1 + $0xd0] ss:$8 sps:$4 sm:$0xff]  }
  0x16   : > { %713 = vmatpush1.bf16.msra.mxu1 %v1698_v21  ;;  %v1717_v48 = vld [vmem:[%s2377_s1 + $0xe4] ss:$8 sps:$4 sm:$0xff]   ;;  %v1719_v49 = vld [vmem:[%s2377_s1 + $0xe0] ss:$8 sps:$4 sm:$0xff]   ;;  %v1723_v50 = vld [vmem:[%s2377_s1 + $0xf4] ss:$8 sps:$4 sm:$0xff]  }
  0x17   : > { %602 = vmatpush1.bf16.msra.mxu0 %v1668_v14  ;;  %714 = vmatprep.subr.bf16.mxu1 %v1702_v23  ;;  %v1734_v51 = vld [vmem:[%s1959_s24 + $0x38] ss:$12 sps:$4 sm:$0xff]   ;;  %v1727_v53 = vld [vmem:[%s1959_s24] ss:$12 sps:$4 sm:$0xff]   ;;  %v1731_v54 = vld [vmem:[%s1959_s24 + $0x1c] ss:$12 sps:$4 sm:$0xff]  }
  0x18   : > { %603 = vmatprep.subr.bf16.mxu0 %v1669_v15  ;;  %v1725_v52 = vld [vmem:[%s2377_s1 + $0xf0] ss:$8 sps:$4 sm:$0xff]   ;;  %v1735_v57 = vld [vmem:[%s1959_s24 + $0x34] ss:$12 sps:$4 sm:$0xff]   ;;  %v1747_v3 = vld [vmem:[%s1959_s24 + $0x7c] ss:$12 sps:$4 sm:$0xff]  }
  0x19   : > { %v1738_v55 = vld [vmem:[%s1959_s24 + $0x50] ss:$12 sps:$4 sm:$0xff]   ;;  %v1733_v56 = vld [vmem:[%s1959_s24 + $0x18] ss:$12 sps:$4 sm:$0xff]   ;;  %v1742_v58 = vld [vmem:[%s1959_s24 + $0x68] ss:$12 sps:$4 sm:$0xff]  }
  0x1a   : > { %715 = vmatpush1.bf16.msra.mxu1 %v1704_v25  ;;  %v1737_v59 = vld [vmem:[%s1959_s24 + $0x30] ss:$12 sps:$4 sm:$0xff]   ;;  %v1739_v60 = vld [vmem:[%s1959_s24 + $0x4c] ss:$12 sps:$4 sm:$0xff]   ;;  %v1741_v62 = vld [vmem:[%s1959_s24 + $0x48] ss:$12 sps:$4 sm:$0xff]  }
  0x1b   : > { %604 = vmatpush1.bf16.msra.mxu0 %v1671_v18  ;;  %716 = vmatprep.subr.bf16.mxu1 %v1708_v27  ;;  %v1746_v61 = vld [vmem:[%s1959_s24 + $0x80] ss:$12 sps:$4 sm:$0xff]   ;;  %v1743_v63 = vld [vmem:[%s1959_s24 + $0x64] ss:$12 sps:$4 sm:$0xff]   ;;  %v1757_v9 = vld [vmem:[%s1959_s24 + $0xa8] ss:$12 sps:$4 sm:$0xff]  }
  0x1c   : > { %605 = vmatprep.subr.bf16.mxu0 %v1672_v20  ;;  %v1750_v0 = vld [vmem:[%s1959_s24 + $0x98] ss:$12 sps:$4 sm:$0xff]   ;;  %v1745_v1 = vld [vmem:[%s1959_s24 + $0x60] ss:$12 sps:$4 sm:$0xff]   ;;  %v1754_v4 = vld [vmem:[%s1959_s24 + $0xb0] ss:$12 sps:$4 sm:$0xff]  }
  0x1d   : > { %v1749_v5 = vld [vmem:[%s1959_s24 + $0x78] ss:$12 sps:$4 sm:$0xff]   ;;  %v1751_v6 = vld [vmem:[%s1959_s24 + $0x94] ss:$12 sps:$4 sm:$0xff]   ;;  %v1753_v7 = vld [vmem:[%s1959_s24 + $0x90] ss:$12 sps:$4 sm:$0xff]  }
  0x1e   : > { %717 = vmatpush1.bf16.msra.mxu1 %v1710_v29  ;;  %v1755_v8 = vld [vmem:[%s1959_s24 + $0xac] ss:$12 sps:$4 sm:$0xff]   ;;  %s1831_s24 = smov 64  }
  0x1f   : > { %606 = vmatpush1.bf16.msra.mxu0 %v1674_v22  ;;  %718 = vmatprep.subr.bf16.mxu1 %v1714_v31 }
  0x20   : > { %607 = vmatprep.subr.bf16.mxu0 %v1675_v24 }
  0x22   : > { %719 = vmatpush1.bf16.msra.mxu1 %v1716_v34 }
  0x23   : > { %608 = vmatpush1.bf16.msra.mxu0 %v1677_v26  ;;  %720 = vmatprep.subr.bf16.mxu1 %v1720_v36 }
  0x24   : > { %609 = vmatprep.subr.bf16.mxu0 %v1681_v28 }
  0x26   : > { %721 = vmatpush1.bf16.msra.mxu1 %v1722_v38 }
  0x27   : > { %610 = vmatpush1.bf16.msra.mxu0 %v1683_v30 }
  0x28   : > { %611 = vmatprep.subr.bf16.mxu0 %v1687_v32 }
  0x29   : > { %739 = vmatmul.mubr.bf16.vlgmr.msra.gmra.mrb[0].mxu1 %v1726_v41 }
  0x2a   : > { %748 = vmatprep.mubr.bf16.mxu1 %v1830_v2 }
  0x2b   : > { %612 = vmatpush1.bf16.msra.mxu0 %v1689_v33 }
  0x2c   : > { %613 = vmatprep.subr.bf16.mxu0 %v1693_v37 }
  0x2f   : > { %614 = vmatpush1.bf16.msra.mxu0 %v1695_v39 }
  0x30   : > { %615 = vmatprep.subr.bf16.mxu0 %v1699_v40 }
  0x31   : > { %749 = vmatmul.mubr.bf16.gmra.mrb[4].mxu1 %v1730_v46 }
  0x32   : > { %758 = vmatprep.mubr.bf16.mxu1 %v1830_v2 }
  0x33   : > { %616 = vmatpush1.bf16.msra.mxu0 %v1701_v42 }
  0x34   : > { %617 = vmatprep.subr.bf16.mxu0 %v1705_v43 }
  0x37   : > { %618 = vmatpush1.bf16.msra.mxu0 %v1707_v44 }
  0x38   : > { %619 = vmatprep.subr.bf16.mxu0 %v1711_v45 }
  0x39   : > { %759 = vmatmul.mubr.bf16.gmra.mrb[8].mxu1 %v1734_v51 }
  0x3a   : > { %768 = vmatprep.mubr.bf16.mxu1 %v1830_v2 }
  0x3b   : > { %620 = vmatpush1.bf16.msra.mxu0 %v1713_v47 }
  0x3c   : > { %621 = vmatprep.subr.bf16.mxu0 %v1717_v48 }
  0x3f   : > { %622 = vmatpush1.bf16.msra.mxu0 %v1719_v49 }
  0x40   : > { %623 = vmatprep.subr.bf16.mxu0 %v1723_v50 }
  0x41   : > { %769 = vmatmul.mubr.bf16.gmra.mrb[12].mxu1 %v1738_v55 }
  0x42   : > { %778 = vmatprep.mubr.bf16.mxu1 %v1830_v2 }
  0x43   : > { %624 = vmatpush1.bf16.msra.mxu0 %v1725_v52 }
  0x46   : > { %626 = vmatmul.mubr.bf16.vlgmr.msra.gmra.mrb[0].mxu0 %v1727_v53 }
  0x47   : > { %635 = vmatprep.mubr.bf16.mxu0 %v1731_v54 }
  0x49   : > { %779 = vmatmul.mubr.bf16.gmra.mrb[16].mxu1 %v1742_v58 }
  0x4a   : > { %788 = vmatprep.mubr.bf16.mxu1 %v1830_v2 }
  0x4e   : > { %636 = vmatmul.mubr.bf16.gmra.mrb[4].mxu0 %v1733_v56 }
  0x4f   : > { %645 = vmatprep.mubr.bf16.mxu0 %v1735_v57 }
  0x51   : > { %789 = vmatmul.mubr.bf16.gmra.mrb[20].mxu1 %v1746_v61 }
  0x52   : > { %798 = vmatprep.mubr.bf16.mxu1 %v1830_v2 }
  0x56   : > { %646 = vmatmul.mubr.bf16.gmra.mrb[8].mxu0 %v1737_v59 }
  0x57   : > { %655 = vmatprep.mubr.bf16.mxu0 %v1739_v60 }
  0x59   : > { %799 = vmatmul.mubr.bf16.gmra.mrb[24].mxu1 %v1750_v0 }
  0x5a   : > { %808 = vmatprep.mubr.bf16.mxu1 %v1830_v2 }
  0x5e   : > { %656 = vmatmul.mubr.bf16.gmra.mrb[12].mxu0 %v1741_v62 }
  0x5f   : > { %665 = vmatprep.mubr.bf16.mxu0 %v1743_v63 }
  0x61   : > { %809 = vmatmul.mubr.bf16.gmra.mrb[28].mxu1 %v1754_v4 }
  0x66   : > { %666 = vmatmul.mubr.bf16.gmra.mrb[16].mxu0 %v1745_v1 }
  0x67   : > { %675 = vmatprep.mubr.bf16.mxu0 %v1747_v3 }
  0x6e   : > { %676 = vmatmul.mubr.bf16.gmra.mrb[20].mxu0 %v1749_v5 }
  0x6f   : > { %685 = vmatprep.mubr.bf16.mxu0 %v1751_v6 }
  0x76   : > { %686 = vmatmul.mubr.bf16.gmra.mrb[24].mxu0 %v1753_v7 }
  0x77   : > { %695 = vmatprep.mubr.bf16.mxu0 %v1755_v8 }
  0x7e   : > { %696 = vmatmul.mubr.bf16.gmra.mrb[28].mxu0 %v1757_v9 }
  0xfc   : > { %v740_v10 = vpop.f32.mrb[0].mxu1 }
  0xfd   : > { %v742_v11 = vpop.f32.mrb[1].mxu1 }
  0xfe   : > { %v744_v12 = vpop.f32.mrb[2].mxu1 }
  0xff   : > { %v746_v13 = vpop.f32.mrb[3].mxu1 }
 0x104   : > { %v750_v2 = vpop.f32.mrb[4].mxu1 }
 0x105   : > { %v752_v14 = vpop.f32.mrb[5].mxu1 }
 0x106   : > { %v754_v15 = vpop.f32.mrb[6].mxu1 }
 0x107   : > { %v756_v16 = vpop.f32.mrb[7].mxu1 }
 0x10c   : > { %v760_v17 = vpop.f32.mrb[8].mxu1 }
 0x10d   : > { %v762_v18 = vpop.f32.mrb[9].mxu1 }
 0x10e   : > { %v764_v19 = vpop.f32.mrb[10].mxu1 }
 0x10f   : > { %v766_v20 = vpop.f32.mrb[11].mxu1 }
 0x114   : > { %v770_v28 = vpop.f32.mrb[12].mxu1 }
 0x115   : > { %v772_v30 = vpop.f32.mrb[13].mxu1 }
 0x116   : > { %v774_v34 = vpop.f32.mrb[14].mxu1 }
 0x117   : > { %v776_v36 = vpop.f32.mrb[15].mxu1 }
 0x119   : > { %v627_v21 = vpop.f32.mrb[0].mxu0 }
 0x11a   : > { %v741_v22 = vadd.f32 %v740_v10, %v627_v21  ;;  %v629_v23 = vpop.f32.mrb[1].mxu0 }
 0x11b   : > { %v743_v24 = vadd.f32 %v742_v11, %v629_v23  ;;  %v631_v25 = vpop.f32.mrb[2].mxu0 }
 0x11c   : > { %v745_v26 = vadd.f32 %v744_v12, %v631_v25  ;;  %v633_v27 = vpop.f32.mrb[3].mxu0  ;;  %v819_v31 = vmul.f32 0.05103104, %v741_v22  ;;  %v780_v45 = vpop.f32.mrb[16].mxu1 }
 0x11d   : > { %v747_v29 = vadd.f32 %v746_v13, %v633_v27  ;;  %v782_v47 = vpop.f32.mrb[17].mxu1 }
 0x11e   : > { %v820_v32 = vmul.f32 0.05103104, %v745_v26  ;;  %v843_v33 = vpack.c.bf16 %v745_v26, %v741_v22  ;;  %v784_v51 = vpop.f32.mrb[18].mxu1 }
 0x11f   : > { %v2043_v35 = vpack.c.bf16 %v747_v29, %v743_v24  ;;  %v786_v53 = vpop.f32.mrb[19].mxu1 }
 0x120   : > { %v835_v37 = vpack.c.bf16 %v820_v32, %v819_v31  ;;  %867 = vrot.lane.b32.xlu0 %v843_v33, %s1831_s24 }
 0x121   : > { %v637_v38 = vpop.f32.mrb[4].mxu0  ;;  %1555 = vmatprep.subr.bf16.mxu0 %v2043_v35 }
 0x122   : > { %v751_v39 = vadd.f32 %v750_v2, %v637_v38  ;;  %v639_v40 = vpop.f32.mrb[5].mxu0  ;;  %1539 = vmatprep.mubr.msk.bf16.mxu1 %vm883_vm0, %v835_v37  ;;  %1556 = vmatpush3.bf16.msra.mxu0 %v2043_v35 }
 0x123   : > { %v753_v41 = vadd.f32 %v752_v14, %v639_v40  ;;  %v641_v42 = vpop.f32.mrb[6].mxu0 }
 0x124   : > { %v755_v43 = vadd.f32 %v754_v15, %v641_v42  ;;  %v643_v44 = vpop.f32.mrb[7].mxu0  ;;  %v2049_v48 = vmul.f32 0.05103104, %v751_v39  ;;  %v790_v62 = vpop.f32.mrb[20].mxu1 }
 0x125   : > { %v757_v46 = vadd.f32 %v756_v16, %v643_v44  ;;  %v792_v0 = vpop.f32.mrb[21].mxu1 }
 0x126   : > { %v2051_v49 = vmul.f32 0.05103104, %v755_v43  ;;  %v844_v50 = vpack.c.bf16 %v755_v43, %v751_v39  ;;  %v794_v5 = vpop.f32.mrb[22].mxu1 }
 0x127   : > { %v2053_v52 = vpack.c.bf16 %v757_v46, %v753_v41  ;;  %v796_v7 = vpop.f32.mrb[23].mxu1 }
 0x128   : > { %v836_v54 = vpack.c.bf16 %v2051_v49, %v2049_v48  ;;  %869 = vrot.lane.b32.xlu0 %v844_v50, %s1831_s24 }
 0x129   : > { %v647_v55 = vpop.f32.mrb[8].mxu0  ;;  %1557 = vmatprep.subr.bf16.mxu0 %v2053_v52 }
 0x12a   : > { %v761_v56 = vadd.f32 %v760_v17, %v647_v55  ;;  %v649_v57 = vpop.f32.mrb[9].mxu0  ;;  %1558 = vmatpush3.bf16.msra.mxu0 %v2053_v52 }
 0x12b   : > { %v763_v58 = vadd.f32 %v762_v18, %v649_v57  ;;  %v651_v59 = vpop.f32.mrb[10].mxu0 }
 0x12c   : > { %v765_v60 = vadd.f32 %v764_v19, %v651_v59  ;;  %v653_v61 = vpop.f32.mrb[11].mxu0  ;;  %v2060_v1 = vmul.f32 0.05103104, %v761_v56  ;;  %v800_v15 = vpop.f32.mrb[24].mxu1 }
 0x12d   : > { %v767_v63 = vadd.f32 %v766_v20, %v653_v61  ;;  %v802_v17 = vpop.f32.mrb[25].mxu1 }
 0x12e   : > { %v2062_v3 = vmul.f32 0.05103104, %v765_v60  ;;  %v845_v4 = vpack.c.bf16 %v765_v60, %v761_v56  ;;  %v804_v21 = vpop.f32.mrb[26].mxu1 }
 0x12f   : > { %v2064_v6 = vpack.c.bf16 %v767_v63, %v763_v58  ;;  %v806_v23 = vpop.f32.mrb[27].mxu1 }
 0x130   : > { %v837_v8 = vpack.c.bf16 %v2062_v3, %v2060_v1  ;;  %871 = vrot.lane.b32.xlu1 %v845_v4, %s1831_s24 }
 0x131   : > { %v657_v9 = vpop.f32.mrb[12].mxu0  ;;  %1559 = vmatprep.subr.bf16.mxu0 %v2064_v6 }
 0x132   : > { %v771_v10 = vadd.f32 %v770_v28, %v657_v9  ;;  %v659_v11 = vpop.f32.mrb[13].mxu0  ;;  %1560 = vmatpush3.bf16.msra.mxu0 %v2064_v6 }
 0x133   : > { %v773_v12 = vadd.f32 %v772_v30, %v659_v11  ;;  %v661_v13 = vpop.f32.mrb[14].mxu0 }
 0x134   : > { %v775_v2 = vadd.f32 %v774_v34, %v661_v13  ;;  %v663_v14 = vpop.f32.mrb[15].mxu0  ;;  %v2071_v18 = vmul.f32 0.05103104, %v771_v10  ;;  %v810_v32 = vpop.f32.mrb[28].mxu1 }
 0x135   : > { %v777_v16 = vadd.f32 %v776_v36, %v663_v14  ;;  %v812_v34 = vpop.f32.mrb[29].mxu1 }
 0x136   : > { %v2073_v19 = vmul.f32 0.05103104, %v775_v2  ;;  %v846_v20 = vpack.c.bf16 %v775_v2, %v771_v10  ;;  %v814_v39 = vpop.f32.mrb[30].mxu1 }
 0x137   : > { %v2075_v22 = vpack.c.bf16 %v777_v16, %v773_v12  ;;  %v816_v41 = vpop.f32.mrb[31].mxu1 }
 0x138   : > { %v838_v24 = vpack.c.bf16 %v2073_v19, %v2071_v18  ;;  %873 = vrot.lane.b32.xlu1 %v846_v20, %s1831_s24 }
 0x139   : > { %v667_v25 = vpop.f32.mrb[16].mxu0  ;;  %1561 = vmatprep.subr.bf16.mxu0 %v2075_v22 }
 0x13a   : > { %v781_v26 = vadd.f32 %v780_v45, %v667_v25  ;;  %v669_v27 = vpop.f32.mrb[17].mxu0  ;;  %1562 = vmatpush3.bf16.msra.mxu0 %v2075_v22 }
 0x13b   : > { %v783_v28 = vadd.f32 %v782_v47, %v669_v27  ;;  %v671_v29 = vpop.f32.mrb[18].mxu0 }
 0x13c   : > { %v785_v30 = vadd.f32 %v784_v51, %v671_v29  ;;  %v673_v31 = vpop.f32.mrb[19].mxu0  ;;  %v2082_v36 = vmul.f32 0.05103104, %v781_v26 }
 0x13d   : > { %v787_v33 = vadd.f32 %v786_v53, %v673_v31 }
 0x13e   : > { %v2084_v37 = vmul.f32 0.05103104, %v785_v30  ;;  %v847_v38 = vpack.c.bf16 %v785_v30, %v781_v26 }
 0x13f   : > { %v2086_v40 = vpack.c.bf16 %v787_v33, %v783_v28 }
 0x140   : > { %v839_v42 = vpack.c.bf16 %v2084_v37, %v2082_v36  ;;  %875 = vrot.lane.b32.xlu0 %v847_v38, %s1831_s24 }
 0x141   : > { %v677_v43 = vpop.f32.mrb[20].mxu0  ;;  %1563 = vmatprep.subr.bf16.mxu0 %v2086_v40 }
 0x142   : > { %v791_v44 = vadd.f32 %v790_v62, %v677_v43  ;;  %v679_v45 = vpop.f32.mrb[21].mxu0  ;;  %1564 = vmatpush3.bf16.msra.mxu0 %v2086_v40 }
 0x143   : > { %v793_v46 = vadd.f32 %v792_v0, %v679_v45  ;;  %v681_v47 = vpop.f32.mrb[22].mxu0 }
 0x144   : > { %v795_v50 = vadd.f32 %v794_v5, %v681_v47  ;;  %v683_v51 = vpop.f32.mrb[23].mxu0  ;;  %v2093_v55 = vmul.f32 0.05103104, %v791_v44 }
 0x145   : > { %v797_v53 = vadd.f32 %v796_v7, %v683_v51 }
 0x146   : > { %v2095_v56 = vmul.f32 0.05103104, %v795_v50  ;;  %v848_v57 = vpack.c.bf16 %v795_v50, %v791_v44 }
 0x147   : > { %v2097_v58 = vpack.c.bf16 %v797_v53, %v793_v46 }
 0x148   : > { %v840_v59 = vpack.c.bf16 %v2095_v56, %v2093_v55  ;;  %877 = vrot.lane.b32.xlu1 %v848_v57, %s1831_s24 }
 0x149   : > { %v687_v60 = vpop.f32.mrb[24].mxu0  ;;  %1565 = vmatprep.subr.bf16.mxu0 %v2097_v58 }
 0x14a   : > { %v801_v61 = vadd.f32 %v800_v15, %v687_v60  ;;  %v689_v62 = vpop.f32.mrb[25].mxu0  ;;  %1566 = vmatpush3.bf16.msra.mxu0 %v2097_v58 }
 0x14b   : > { %v803_v63 = vadd.f32 %v802_v17, %v689_v62  ;;  %v691_v0 = vpop.f32.mrb[26].mxu0 }
 0x14c   : > { %v805_v4 = vadd.f32 %v804_v21, %v691_v0  ;;  %v693_v5 = vpop.f32.mrb[27].mxu0  ;;  %v2104_v9 = vmul.f32 0.05103104, %v801_v61 }
 0x14d   : > { %v807_v7 = vadd.f32 %v806_v23, %v693_v5 }
 0x14e   : > { %v2106_v10 = vmul.f32 0.05103104, %v805_v4  ;;  %v849_v11 = vpack.c.bf16 %v805_v4, %v801_v61 }
 0x14f   : > { %v2108_v12 = vpack.c.bf16 %v807_v7, %v803_v63 }
 0x150   : > { %v841_v13 = vpack.c.bf16 %v2106_v10, %v2104_v9  ;;  %879 = vrot.lane.b32.xlu0 %v849_v11, %s1831_s24 }
 0x151   : > { %v697_v2 = vpop.f32.mrb[28].mxu0  ;;  %1567 = vmatprep.subr.bf16.mxu0 %v2108_v12 }
 0x152   : > { %v811_v14 = vadd.f32 %v810_v32, %v697_v2  ;;  %v699_v15 = vpop.f32.mrb[29].mxu0  ;;  %1568 = vmatpush3.bf16.msra.mxu0 %v2108_v12 }
 0x153   : > { %v813_v16 = vadd.f32 %v812_v34, %v699_v15  ;;  %v701_v17 = vpop.f32.mrb[30].mxu0 }
 0x154   : > { %v815_v20 = vadd.f32 %v814_v39, %v701_v17  ;;  %v703_v21 = vpop.f32.mrb[31].mxu0  ;;  %v833_v25 = vmul.f32 0.05103104, %v811_v14 }
 0x155   : > { %v817_v23 = vadd.f32 %v816_v41, %v703_v21 }
 0x156   : > { %v834_v26 = vmul.f32 0.05103104, %v815_v20  ;;  %v850_v27 = vpack.c.bf16 %v815_v20, %v811_v14 }
 0x157   : > { %v858_v28 = vpack.c.bf16 %v817_v23, %v813_v16 }
 0x158   : > { %v842_v29 = vpack.c.bf16 %v834_v26, %v833_v25  ;;  %881 = vrot.lane.b32.xlu1 %v850_v27, %s1831_s24 }
 0x159   : > { %1569 = vmatprep.subr.bf16.mxu0 %v858_v28 }
 0x15a   : > { %1570 = vmatpush3.bf16.msra.mxu0 %v858_v28 }
 0x192   : > { %v868_v30 = vpop.permute.xlu0 %867 }
 0x193   : > { %v909_v31 = vsel %vm883_vm0, %v868_v30, 0  ;;  %1635 = vmatprep.subr.msk.bf16.mxu1 %vm883_vm0, %v868_v30 }
 0x194   : > { %1524 = vmatpush3.bf16.xpose.msra.mxu1 %v909_v31 }
 0x19a   : > { %v870_v32 = vpop.permute.xlu0 %869 }
 0x19b   : > { %v912_v33 = vsel %vm883_vm0, %v870_v32, 0  ;;  %1636 = vmatprep.subr.msk.bf16.mxu1 %vm883_vm0, %v870_v32 }
 0x19c   : > { %1526 = vmatpush3.bf16.xpose.msra.mxu1 %v912_v33 }
 0x1a2   : > { %v872_v34 = vpop.permute.xlu1 %871 }
 0x1a3   : > { %v915_v38 = vsel %vm883_vm0, %v872_v34, 0  ;;  %1637 = vmatprep.subr.msk.bf16.mxu1 %vm883_vm0, %v872_v34 }
 0x1a4   : > { %1528 = vmatpush3.bf16.xpose.msra.mxu1 %v915_v38 }
 0x1aa   : > { %v874_v39 = vpop.permute.xlu1 %873 }
 0x1ab   : > { %v918_v41 = vsel %vm883_vm0, %v874_v39, 0  ;;  %1638 = vmatprep.subr.msk.bf16.mxu1 %vm883_vm0, %v874_v39 }
 0x1ac   : > { %1530 = vmatpush3.bf16.xpose.msra.mxu1 %v918_v41 }
 0x1b2   : > { %v876_v43 = vpop.permute.xlu0 %875 }
 0x1b3   : > { %v921_v44 = vsel %vm883_vm0, %v876_v43, 0  ;;  %1639 = vmatprep.subr.msk.bf16.mxu1 %vm883_vm0, %v876_v43 }
 0x1b4   : > { %1532 = vmatpush3.bf16.xpose.msra.mxu1 %v921_v44 }
 0x1ba   : > { %v878_v45 = vpop.permute.xlu1 %877 }
 0x1bb   : > { %v924_v46 = vsel %vm883_vm0, %v878_v45, 0  ;;  %1640 = vmatprep.subr.msk.bf16.mxu1 %vm883_vm0, %v878_v45 }
 0x1bc   : > { %1534 = vmatpush3.bf16.xpose.msra.mxu1 %v924_v46 }
 0x1c2   : > { %v880_v47 = vpop.permute.xlu0 %879 }
 0x1c3   : > { %v927_v50 = vsel %vm883_vm0, %v880_v47, 0  ;;  %1641 = vmatprep.subr.msk.bf16.mxu1 %vm883_vm0, %v880_v47 }
 0x1c4   : > { %1536 = vmatpush3.bf16.xpose.msra.mxu1 %v927_v50 }
 0x1ca   : > { %v882_v51 = vpop.permute.xlu1 %881 }
 0x1cb   : > { %v930_v53 = vsel %vm883_vm0, %v882_v51, 0  ;;  %1642 = vmatprep.subr.msk.bf16.mxu1 %vm883_vm0, %v882_v51 }
 0x1cc   : > { %1538 = vmatpush3.bf16.xpose.msra.mxu1 %v930_v53 }
 0x1cd   : > { %1587 = vmatprep.subr.bf16.mxu1 %v2043_v35 }
 0x1d3   : > { %1540 = vmatmul.mubr.msk.bf16.vlgmr.msra.gmra.mrb[32].mxu1 %vm883_vm0, %v836_v54 }
 0x1d4   : > { %1543 = vmatprep.mubr.msk.bf16.mxu1 %vm883_vm0, %v837_v8  ;;  %1595 = vmatpush3.bf16.msra.mxu1 %v2043_v35  ;;  %v1029_v35 = vlaneseq }
 0x1d5   : > { %1588 = vmatprep.subr.bf16.mxu1 %v2053_v52 }
 0x1d6   : > { %v2171_v48 = vshrl.u32 %v1029_v35, 7 }
 0x1d8   : > { %1596 = vmatpush3.bf16.msra.mxu1 %v2053_v52  ;;  %v1032_v49 = vadd.s32 16, %v2171_v48  ;;  %v2174_v52 = vand.u32 127, %v1029_v35  ;;  %v1031_v54 = vadd.s32 8, %v2171_v48  ;;  %v1033_v1 = vadd.s32 24, %v2171_v48 }
 0x1d9   : > { %1589 = vmatprep.subr.bf16.mxu1 %v2064_v6  ;;  %v1035_v37 = vadd.s32 40, %v2171_v48  ;;  %v1038_v61 = vadd.s32 64, %v2171_v48  ;;  %v1041_v0 = vadd.s32 88, %v2171_v48  ;;  %v1037_v14 = vadd.s32 56, %v2171_v48 }
 0x1da   : > { %vm1050_vm1 = vcmp.le.s32.totalorder %v2174_v52, %v1032_v49  ;;  %vm1048_vm2 = vcmp.le.s32.totalorder %v2174_v52, %v2171_v48  ;;  %vm1049_vm3 = vcmp.le.s32.totalorder %v2174_v52, %v1031_v54  ;;  %vm1051_vm4 = vcmp.le.s32.totalorder %v2174_v52, %v1033_v1 }
 0x1db   : > { %1544 = vmatmul.mubr.msk.bf16.gmra.mrb[36].mxu1 %vm883_vm0, %v838_v24  ;;  %vm1053_vm6 = vcmp.le.s32.totalorder %v2174_v52, %v1035_v37  ;;  %vm1056_vm9 = vcmp.le.s32.totalorder %v2174_v52, %v1038_v61  ;;  %vm1059_vm10 = vcmp.le.s32.totalorder %v2174_v52, %v1041_v0  ;;  %v1044_v15 = vadd.s32 112, %v2171_v48 }
 0x1dc   : > { %1547 = vmatprep.mubr.msk.bf16.mxu1 %vm883_vm0, %v839_v42  ;;  %1597 = vmatpush3.bf16.msra.mxu1 %v2064_v6  ;;  %v1034_v42 = vadd.s32 32, %v2171_v48  ;;  %vm1055_vm13 = vcmp.le.s32.totalorder %v2174_v52, %v1037_v14  ;;  %v1043_v26 = vadd.s32 104, %v2171_v48 }
 0x1dd   : > { %1590 = vmatprep.subr.bf16.mxu1 %v2075_v22  ;;  %vm1062_vm14 = vcmp.le.s32.totalorder %v2174_v52, %v1044_v15 }
 0x1de   : > { %vm1052_vm7 = vcmp.le.s32.totalorder %v2174_v52, %v1034_v42  ;;  %vm1061_vm15 = vcmp.le.s32.totalorder %v2174_v52, %v1043_v26 }
 0x1e0   : > { %1598 = vmatpush3.bf16.msra.mxu1 %v2075_v22  ;;  %v1036_v22 = vadd.s32 48, %v2171_v48 }
 0x1e1   : > { %1591 = vmatprep.subr.bf16.mxu1 %v2086_v40 }
 0x1e2   : > { %vm1054_vm5 = vcmp.le.s32.totalorder %v2174_v52, %v1036_v22 }
 0x1e3   : > { %1548 = vmatmul.mubr.msk.bf16.gmra.mrb[40].mxu1 %vm883_vm0, %v840_v59  ;;  %v1040_v59 = vadd.s32 80, %v2171_v48 }
 0x1e4   : > { %1551 = vmatprep.mubr.msk.bf16.mxu1 %vm883_vm0, %v841_v13  ;;  %1599 = vmatpush3.bf16.msra.mxu1 %v2086_v40  ;;  %v1042_v13 = vadd.s32 96, %v2171_v48 }
 0x1e5   : > { %1592 = vmatprep.subr.bf16.mxu1 %v2097_v58  ;;  %vm1058_vm8 = vcmp.le.s32.totalorder %v2174_v52, %v1040_v59 }
 0x1e6   : > { %vm1060_vm12 = vcmp.le.s32.totalorder %v2174_v52, %v1042_v13 }
 0x1e8   : > { %1600 = vmatpush3.bf16.msra.mxu1 %v2097_v58 }
 0x1e9   : > { %1593 = vmatprep.subr.bf16.mxu1 %v2108_v12 }
 0x1eb   : > { %1552 = vmatmul.mubr.msk.bf16.gmra.mrb[44].mxu1 %vm883_vm0, %v842_v29  ;;  %v1045_v29 = vadd.s32 120, %v2171_v48 }
 0x1ec   : > { %1601 = vmatpush3.bf16.msra.mxu1 %v2108_v12  ;;  %v1039_v12 = vadd.s32 72, %v2171_v48 }
 0x1ed   : > { %1594 = vmatprep.subr.bf16.mxu1 %v858_v28 }
 0x1ee   : > { %vm1057_vm11 = vcmp.le.s32.totalorder %v2174_v52, %v1039_v12 }
 0x1f0   : > { %1602 = vmatpush3.bf16.msra.mxu1 %v858_v28 }
 0x2a6   : > { %v1541_v3 = vpop.f32.mrb[32].mxu1 }
 0x2a7   : > { %v966_v6 = vpop.f32.mrb[33].mxu1  ;;  %v2181_v8 = vsel %vm1050_vm1, %v1541_v3, -inf  ;;  %vm1063_vm1 = vcmp.le.s32.totalorder %v2174_v52, %v1045_v29 }
 0x2a8   : > { %1084 = vmax.xlane.f32.xlu1 %v2181_v8  ;;  %v1542_v18 = vpop.f32.mrb[34].mxu1  ;;  %v2185_v19 = vsel %vm1048_vm2, %v966_v6, -inf }
 0x2a9   : > { %1080 = vmax.xlane.f32.xlu0 %v2185_v19  ;;  %v969_v24 = vpop.f32.mrb[35].mxu1  ;;  %v2194_v40 = vsel %vm1051_vm4, %v1542_v18, -inf }
 0x2aa   : > { %v2190_v36 = vsel %vm1049_vm3, %v969_v24, -inf }
 0x2ac   : > { %1082 = vmax.xlane.f32.xlu1 %v2190_v36 }
 0x2ad   : > { %1086 = vmax.xlane.f32.xlu0 %v2194_v40 }
 0x2ae   : > { %v1545_v55 = vpop.f32.mrb[36].mxu1 }
 0x2af   : > { %v982_v56 = vpop.f32.mrb[37].mxu1  ;;  %v2199_v57 = vsel %vm1054_vm5, %v1545_v55, -inf }
 0x2b0   : > { %1092 = vmax.xlane.f32.xlu1 %v2199_v57  ;;  %v1546_v58 = vpop.f32.mrb[38].mxu1  ;;  %v2209_v63 = vsel %vm1052_vm7, %v982_v56, -inf }
 0x2b1   : > { %v985_v60 = vpop.f32.mrb[39].mxu1  ;;  %v2240_v27 = vsel %vm1055_vm13, %v1546_v58, -inf }
 0x2b2   : > { %v2206_v62 = vsel %vm1053_vm6, %v985_v60, -inf }
 0x2b3   : > { %1090 = vmax.xlane.f32.xlu0 %v2206_v62 }
 0x2b4   : > { %1088 = vmax.xlane.f32.xlu1 %v2209_v63 }
 0x2b6   : > { %v1549_v4 = vpop.f32.mrb[40].mxu1 }
 0x2b7   : > { %v998_v5 = vpop.f32.mrb[41].mxu1  ;;  %v2215_v7 = vsel %vm1058_vm8, %v1549_v4, -inf }
 0x2b8   : > { %1100 = vmax.xlane.f32.xlu1 %v2215_v7  ;;  %v1550_v9 = vpop.f32.mrb[42].mxu1  ;;  %v2218_v10 = vsel %vm1056_vm9, %v998_v5, -inf }
 0x2b9   : > { %1096 = vmax.xlane.f32.xlu0 %v2218_v10  ;;  %v1001_v11 = vpop.f32.mrb[43].mxu1  ;;  %v2224_v2 = vsel %vm1059_vm10, %v1550_v9, -inf }
 0x2ba   : > { %v2231_v21 = vsel %vm1057_vm11, %v1001_v11, -inf }
 0x2bd   : > { %1102 = vmax.xlane.f32.xlu0 %v2224_v2 }
 0x2be   : > { %v1553_v16 = vpop.f32.mrb[44].mxu1 }
 0x2bf   : > { %v1014_v17 = vpop.f32.mrb[45].mxu1  ;;  %v2242_v28 = vsel %vm1062_vm14, %v1553_v16, -inf }
 0x2c0   : > { %v1554_v20 = vpop.f32.mrb[46].mxu1  ;;  %v2233_v23 = vsel %vm1060_vm12, %v1014_v17, -inf }
 0x2c1   : > { %1098 = vmax.xlane.f32.xlu0 %v2231_v21  ;;  %1104 = vmax.xlane.f32.xlu1 %v2233_v23  ;;  %v1017_v25 = vpop.f32.mrb[47].mxu1  ;;  %v2252_v31 = vsel %vm1063_vm1, %v1554_v20, -inf }
 0x2c2   : > { %v2248_v30 = vsel %vm1061_vm15, %v1017_v25, -inf }
 0x2c5   : > { %1094 = vmax.xlane.f32.xlu0 %v2240_v27  ;;  %1108 = vmax.xlane.f32.xlu1 %v2242_v28 }
 0x2c9   : > { %1106 = vmax.xlane.f32.xlu0 %v2248_v30 }
 0x2cd   : > { %1110 = vmax.xlane.f32.xlu0 %v2252_v31 }
 0x335   : > { %v1085_v32 = vpop.xlane.xlu1 %1084 }
 0x336   : > { %v1114_v33 = vsub.f32 %v2181_v8, %v1085_v32  ;;  %v1081_v34 = vpop.xlane.xlu0 %1080 }
 0x337   : > { %v1112_v38 = vsub.f32 %v2185_v19, %v1081_v34 }
 0x338   : > { %v1132_v39 = vmul.f32 1.442695, %v1114_v33 }
 0x339   : > { %v1083_v41 = vpop.xlane.xlu1 %1082  ;;  %v1128_v43 = vmul.f32 1.442695, %v1112_v38 }
 0x33a   : > { %1758 = vpow2.f32 %v1132_v39  ;;  %v1087_v44 = vpop.xlane.xlu0 %1086  ;;  %v1113_v45 = vsub.f32 %v2190_v36, %v1083_v41 }
 0x33b   : > { %v1115_v46 = vsub.f32 %v2194_v40, %v1087_v44  ;;  %1760 = vpow2.f32 %v1128_v43 }
 0x33c   : > { %v1130_v51 = vmul.f32 1.442695, %v1113_v45 }
 0x33d   : > { %v1134_v47 = vmul.f32 1.442695, %v1115_v46  ;;  %v1093_v50 = vpop.xlane.xlu1 %1092 }
 0x33e   : > { %v1118_v36 = vsub.f32 %v2199_v57, %v1093_v50 }
 0x33f   : > { %1762 = vpow2.f32 %v1134_v47 }
 0x340   : > { %v1091_v53 = vpop.xlane.xlu0 %1090  ;;  %1764 = vpow2.f32 %v1130_v51  ;;  %v1140_v58 = vmul.f32 1.442695, %v1118_v36 }
 0x341   : > { %v1117_v35 = vsub.f32 %v2206_v62, %v1091_v53  ;;  %v1089_v48 = vpop.xlane.xlu1 %1088 }
 0x342   : > { %v1116_v49 = vsub.f32 %v2209_v63, %v1089_v48 }
 0x343   : > { %v1138_v52 = vmul.f32 1.442695, %v1117_v35 }
 0x344   : > { %v2261_v54 = vpop.eup %1758  ;;  %v1136_v1 = vmul.f32 1.442695, %v1116_v49 }
 0x345   : > { %v1101_v3 = vpop.xlane.xlu1 %1100  ;;  %1164 = vadd.xlane.f32.xlu1 %v2261_v54  ;;  %v2266_v19 = vpop.eup %1760 }
 0x346   : > { %1766 = vpow2.f32 %v1136_v1  ;;  %v1122_v6 = vsub.f32 %v2215_v7, %v1101_v3  ;;  %v1097_v8 = vpop.xlane.xlu0 %1096 }
 0x347   : > { %1768 = vpow2.f32 %v1138_v52  ;;  %v1120_v18 = vsub.f32 %v2218_v10, %v1097_v8 }
 0x348   : > { %v1148_v22 = vmul.f32 1.442695, %v1122_v6 }
 0x349   : > { %v2268_v24 = vpop.eup %1762  ;;  %1160 = vadd.xlane.f32.xlu1 %v2266_v19  ;;  %v1144_v37 = vmul.f32 1.442695, %v1120_v18 }
 0x34a   : > { %1770 = vpow2.f32 %v1148_v22  ;;  %v1103_v40 = vpop.xlane.xlu0 %1102  ;;  %1166 = vadd.xlane.f32.xlu0 %v2268_v24  ;;  %v2274_v55 = vpop.eup %1764 }
 0x34b   : > { %v1123_v42 = vsub.f32 %v2224_v2, %v1103_v40  ;;  %1772 = vpow2.f32 %v1144_v37 }
 0x34d   : > { %v1150_v56 = vmul.f32 1.442695, %v1123_v42 }
 0x34e   : > { %v1099_v59 = vpop.xlane.xlu0 %1098  ;;  %v1105_v60 = vpop.xlane.xlu1 %1104  ;;  %1162 = vadd.xlane.f32.xlu0 %v2274_v55 }
 0x34f   : > { %1774 = vpow2.f32 %v1150_v56  ;;  %v1121_v61 = vsub.f32 %v2231_v21, %v1099_v59  ;;  %v1124_v57 = vsub.f32 %v2233_v23, %v1105_v60 }
 0x350   : > { %v2279_v62 = vpop.eup %1766  ;;  %1776 = vpow2.f32 %v1140_v58 }
 0x351   : > { %v2281_v63 = vpop.eup %1768  ;;  %v1146_v0 = vmul.f32 1.442695, %v1121_v61  ;;  %1168 = vadd.xlane.f32.xlu1 %v2279_v62  ;;  %v1152_v4 = vmul.f32 1.442695, %v1124_v57 }
 0x352   : > { %v1095_v5 = vpop.xlane.xlu0 %1094  ;;  %v1109_v7 = vpop.xlane.xlu1 %1108  ;;  %1170 = vadd.xlane.f32.xlu0 %v2281_v63 }
 0x353   : > { %1778 = vpow2.f32 %v1146_v0  ;;  %v1119_v9 = vsub.f32 %v2240_v27, %v1095_v5  ;;  %v1126_v10 = vsub.f32 %v2242_v28, %v1109_v7 }
 0x354   : > { %v2287_v11 = vpop.eup %1770  ;;  %1780 = vpow2.f32 %v1152_v4 }
 0x355   : > { %v1142_v12 = vmul.f32 1.442695, %v1119_v9  ;;  %1180 = vadd.xlane.f32.xlu1 %v2287_v11  ;;  %v1156_v13 = vmul.f32 1.442695, %v1126_v10  ;;  %v2291_v15 = vpop.eup %1772 }
 0x356   : > { %v1107_v2 = vpop.xlane.xlu0 %1106 }
 0x357   : > { %1782 = vpow2.f32 %v1142_v12  ;;  %v1125_v14 = vsub.f32 %v2248_v30, %v1107_v2 }
 0x358   : > { %1784 = vpow2.f32 %v1156_v13 }
 0x359   : > { %v2293_v16 = vpop.eup %1774  ;;  %v1154_v17 = vmul.f32 1.442695, %v1125_v14  ;;  %1176 = vadd.xlane.f32.xlu1 %v2291_v15 }
 0x35a   : > { %1182 = vadd.xlane.f32.xlu0 %v2293_v16  ;;  %v1111_v20 = vpop.xlane.xlu0 %1110  ;;  %v2298_v23 = vpop.eup %1776 }
 0x35b   : > { %1786 = vpow2.f32 %v1154_v17  ;;  %v1127_v21 = vsub.f32 %v2252_v31, %v1111_v20 }
 0x35d   : > { %v2300_v25 = vpop.eup %1778  ;;  %v1158_v26 = vmul.f32 1.442695, %v1127_v21  ;;  %1172 = vadd.xlane.f32.xlu1 %v2298_v23 }
 0x35e   : > { %1178 = vadd.xlane.f32.xlu0 %v2300_v25  ;;  %v2304_v27 = vpop.eup %1780 }
 0x35f   : > { %1788 = vpow2.f32 %v1158_v26 }
 0x361   : > { %v2306_v28 = vpop.eup %1782  ;;  %1184 = vadd.xlane.f32.xlu1 %v2304_v27 }
 0x362   : > { %1174 = vadd.xlane.f32.xlu0 %v2306_v28  ;;  %v2310_v29 = vpop.eup %1784 }
 0x365   : > { %v2312_v30 = vpop.eup %1786  ;;  %1188 = vadd.xlane.f32.xlu1 %v2310_v29 }
 0x366   : > { %1186 = vadd.xlane.f32.xlu0 %v2312_v30 }
 0x369   : > { %v2316_v31 = vpop.eup %1788 }
 0x36a   : > { %1190 = vadd.xlane.f32.xlu0 %v2316_v31 }
 0x3d2   : > { %v1165_v32 = vpop.xlane.xlu1 %1164 }
 0x3d6   : > { %v1161_v33 = vpop.xlane.xlu1 %1160 }
 0x3d7   : > { %v1167_v34 = vpop.xlane.xlu0 %1166 }
 0x3d8   : > { %1790 = vrcp.f32 %v1167_v34 }
 0x3d9   : > { %1792 = vrcp.f32 %v1161_v33 }
 0x3da   : > { %1794 = vrcp.f32 %v1165_v32 }
 0x3db   : > { %v1163_v38 = vpop.xlane.xlu0 %1162 }
 0x3dc   : > { %1796 = vrcp.f32 %v1163_v38 }
 0x3de   : > { %v1169_v39 = vpop.xlane.xlu1 %1168 }
 0x3df   : > { %1798 = vrcp.f32 %v1169_v39  ;;  %v1171_v41 = vpop.xlane.xlu0 %1170 }
 0x3e0   : > { %1800 = vrcp.f32 %v1171_v41 }
 0x3e2   : > { %v1181_v43 = vpop.xlane.xlu1 %1180  ;;  %v1791_v44 = vpop.eup %1790 }
 0x3e3   : > { %v1793_v45 = vpop.eup %1792  ;;  %v1211_v50 = vmul.f32 %v1791_v44, %v2268_v24 }
 0x3e4   : > { %v1795_v46 = vpop.eup %1794  ;;  %v1208_v35 = vmul.f32 %v1793_v45, %v2266_v19 }
 0x3e5   : > { %v1210_v49 = vmul.f32 %v1795_v46, %v2261_v54 }
 0x3e6   : > { %v1797_v47 = vpop.eup %1796  ;;  %v1177_v51 = vpop.xlane.xlu1 %1176 }
 0x3e7   : > { %v1183_v53 = vpop.xlane.xlu0 %1182  ;;  %v1209_v48 = vmul.f32 %v1797_v47, %v2274_v55  ;;  %v1225_v8 = vpack.c.bf16 %v1211_v50, %v1210_v49 }
 0x3e8   : > { %1802 = vrcp.f32 %v1183_v53 }
 0x3e9   : > { %v1799_v52 = vpop.eup %1798  ;;  %v1224_v1 = vpack.c.bf16 %v1209_v48, %v1208_v35  ;;  %1804 = vrcp.f32 %v1177_v51 }
 0x3ea   : > { %v1801_v3 = vpop.eup %1800  ;;  %v1173_v6 = vpop.xlane.xlu1 %1172  ;;  %v1212_v18 = vmul.f32 %v1799_v52, %v2279_v62  ;;  %1806 = vrcp.f32 %v1181_v43 }
 0x3eb   : > { %1571 = vmatprep.mubr.bf16.mxu0 %v1224_v1  ;;  %v1179_v22 = vpop.xlane.xlu0 %1178  ;;  %v1213_v24 = vmul.f32 %v1801_v3, %v2281_v63 }
 0x3ec   : > { %1808 = vrcp.f32 %v1179_v22  ;;  %1572 = vmatmul.mubr.bf16.vlgmr.msra.gmra.mrb[32].mxu0 %v1225_v8 }
 0x3ed   : > { %v1226_v19 = vpack.c.bf16 %v1213_v24, %v1212_v18  ;;  %1810 = vrcp.f32 %v1173_v6 }
 0x3ee   : > { %v1185_v36 = vpop.xlane.xlu1 %1184 }
 0x3ef   : > { %v1175_v54 = vpop.xlane.xlu0 %1174  ;;  %1575 = vmatprep.mubr.bf16.mxu0 %v1226_v19 }
 0x3f0   : > { %1812 = vrcp.f32 %v1175_v54 }
 0x3f1   : > { %1814 = vrcp.f32 %v1185_v36 }
 0x3f2   : > { %v1803_v37 = vpop.eup %1802  ;;  %v1189_v40 = vpop.xlane.xlu1 %1188 }
 0x3f3   : > { %v1187_v42 = vpop.xlane.xlu0 %1186  ;;  %v1805_v55 = vpop.eup %1804  ;;  %v1219_v59 = vmul.f32 %v1803_v37, %v2293_v16 }
 0x3f4   : > { %1816 = vrcp.f32 %v1187_v42  ;;  %v1807_v56 = vpop.eup %1806  ;;  %v1216_v61 = vmul.f32 %v1805_v55, %v2291_v15 }
 0x3f5   : > { %1818 = vrcp.f32 %v1189_v40  ;;  %v1218_v63 = vmul.f32 %v1807_v56, %v2287_v11 }
 0x3f6   : > { %v1809_v58 = vpop.eup %1808 }
 0x3f7   : > { %v1191_v60 = vpop.xlane.xlu0 %1190  ;;  %v1217_v57 = vmul.f32 %v1809_v58, %v2300_v25  ;;  %v1811_v62 = vpop.eup %1810  ;;  %v1229_v5 = vpack.c.bf16 %v1219_v59, %v1218_v63 }
 0x3f8   : > { %1820 = vrcp.f32 %v1191_v60  ;;  %v1214_v7 = vmul.f32 %v1811_v62, %v2298_v23 }
 0x3f9   : > { %v1228_v0 = vpack.c.bf16 %v1217_v57, %v1216_v61 }
 0x3fa   : > { %v1813_v4 = vpop.eup %1812 }
 0x3fb   : > { %1579 = vmatprep.mubr.bf16.mxu1 %v1228_v0  ;;  %v1215_v9 = vmul.f32 %v1813_v4, %v2306_v28  ;;  %v1815_v10 = vpop.eup %1814 }
 0x3fc   : > { %1580 = vmatmul.mubr.bf16.vlgmr.msra.gmra.mrb[48].mxu1 %v1229_v5  ;;  %v1220_v2 = vmul.f32 %v1815_v10, %v2304_v27 }
 0x3fd   : > { %v1227_v12 = vpack.c.bf16 %v1215_v9, %v1214_v7 }
 0x3fe   : > { %v1817_v13 = vpop.eup %1816 }
 0x3ff   : > { %1576 = vmatmul.mubr.bf16.gmra.mrb[36].mxu0 %v1227_v12  ;;  %v1221_v14 = vmul.f32 %v1817_v13, %v2312_v30  ;;  %v1819_v11 = vpop.eup %1818 }
 0x400   : > { %v1222_v17 = vmul.f32 %v1819_v11, %v2310_v29 }
 0x401   : > { %v1230_v15 = vpack.c.bf16 %v1221_v14, %v1220_v2 }
 0x402   : > { %v1821_v16 = vpop.eup %1820 }
 0x403   : > { %1583 = vmatprep.mubr.bf16.mxu1 %v1230_v15  ;;  %v1223_v20 = vmul.f32 %v1821_v16, %v2316_v31 }
 0x405   : > { %v1231_v21 = vpack.c.bf16 %v1223_v20, %v1222_v17 }
 0x407   : > { %1584 = vmatmul.mubr.bf16.gmra.mrb[52].mxu1 %v1231_v21 }
 0x4bf   : > { %v1573_v23 = vpop.f32.mrb[32].mxu0 }
 0x4c0   : > { %1331 = vst.msk [vmem:[%s2339_s11 + $0x10] sm:$0xff] %vm883_vm0, %v1573_v23  ;;  %v1266_v25 = vpop.f32.mrb[33].mxu0 }
 0x4c1   : > { %1329 = vst.msk [vmem:[%s2339_s11] sm:$0xff] %vm883_vm0, %v1266_v25  ;;  %v1574_v26 = vpop.f32.mrb[34].mxu0 }
 0x4c2   : > { %1332 = vst.msk [vmem:[%s2339_s11 + $0x18] sm:$0xff] %vm883_vm0, %v1574_v26  ;;  %v1269_v27 = vpop.f32.mrb[35].mxu0 }
 0x4c3   : > { %1330 = vst.msk [vmem:[%s2339_s11 + $0x8] sm:$0xff] %vm883_vm0, %v1269_v27 }
 0x4cf   : > { %v1581_v28 = vpop.f32.mrb[48].mxu1 }
 0x4d0   : > { %1339 = vst.msk [vmem:[%s2339_s11 + $0x50] sm:$0xff] %vm883_vm0, %v1581_v28  ;;  %v1298_v29 = vpop.f32.mrb[49].mxu1 }
 0x4d1   : > { %1337 = vst.msk [vmem:[%s2339_s11 + $0x40] sm:$0xff] %vm883_vm0, %v1298_v29  ;;  %v1582_v30 = vpop.f32.mrb[50].mxu1 }
 0x4d2   : > { %1340 = vst.msk [vmem:[%s2339_s11 + $0x58] sm:$0xff] %vm883_vm0, %v1582_v30  ;;  %v1577_v31 = vpop.f32.mrb[36].mxu0  ;;  %v1301_v32 = vpop.f32.mrb[51].mxu1 }
 0x4d3   : > { %1335 = vst.msk [vmem:[%s2339_s11 + $0x30] sm:$0xff] %vm883_vm0, %v1577_v31  ;;  %1338 = vst.msk [vmem:[%s2339_s11 + $0x48] sm:$0xff] %vm883_vm0, %v1301_v32  ;;  %v1282_v33 = vpop.f32.mrb[37].mxu0 }
 0x4d4   : > { %1333 = vst.msk [vmem:[%s2339_s11 + $0x20] sm:$0xff] %vm883_vm0, %v1282_v33  ;;  %v1578_v34 = vpop.f32.mrb[38].mxu0 }
 0x4d5   : > { %1336 = vst.msk [vmem:[%s2339_s11 + $0x38] sm:$0xff] %vm883_vm0, %v1578_v34  ;;  %v1285_v38 = vpop.f32.mrb[39].mxu0 }
 0x4d6   : > { %1334 = vst.msk [vmem:[%s2339_s11 + $0x28] sm:$0xff] %vm883_vm0, %v1285_v38 }
 0x4da   : > { %v1585_v39 = vpop.f32.mrb[52].mxu1 }
 0x4db   : > { %1343 = vst.msk [vmem:[%s2339_s11 + $0x70] sm:$0xff] %vm883_vm0, %v1585_v39  ;;  %v1314_v41 = vpop.f32.mrb[53].mxu1 }
 0x4dc   : > { %1341 = vst.msk [vmem:[%s2339_s11 + $0x60] sm:$0xff] %vm883_vm0, %v1314_v41  ;;  %v1586_v43 = vpop.f32.mrb[54].mxu1 }
 0x4dd   : > { %1344 = vst.msk [vmem:[%s2339_s11 + $0x78] sm:$0xff] %vm883_vm0, %v1586_v43  ;;  %v1317_v44 = vpop.f32.mrb[55].mxu1 }
 0x4de   : > { %1342 = vst.msk [vmem:[%s2339_s11 + $0x68] sm:$0xff] %vm883_vm0, %v1317_v44 }
 0x4df PF: > { %s12_s9 = sadd.s32 1, %s1828_s9  }
 0x4e0   : > { %p9_p4 = scmp.ge.s32.totalorder %s12_s9, 4  }
 0x4e2   :  { %11 = sbr.rel (!%p9_p4) target bundleno = 1 (0x1), region = 58 }

</bundles_post_ra>
